<compile_context>
chip_gen: v7x
topology: tpu7x:2x2x1
jax: 0.10.0
libtpu: 0.0.40
codegen_flags: <defaults>
</compile_context>

<pallas_src>
import jax
import jax.numpy as jnp
from jax import lax
from jax.experimental import pallas as pl
from jax.experimental.pallas import tpu as pltpu


def _round_up(v, m):
    return ((v + m - 1) // m) * m


def _vmem_capacity_bytes():
    """Physical VMEM of the local TPU generation (fallback: v7x's 64 MiB)."""
    try:
        info = pltpu.get_tpu_info()
        cap = getattr(info, "vmem_capacity_bytes", None)
        if cap:
            return int(cap)
    except Exception:
        pass
    return 64 * 1024 * 1024


def _footprint(tm, tn, tk, in_item, out_item, k_tiled):
    # Double-buffered x / w / bias tiles + double-buffered output tile
    # (+ f32 accumulator scratch when the contraction is grid-tiled).
    dbuf = 2 * (tm * tk + tk * tn + tn) * in_item + 2 * tm * tn * out_item
    return dbuf + (tm * tn * 4 if k_tiled else 0)


def _select_tiles(batch, d_in, d_out, in_item, out_item, budget, sub_m, tm_max, tn_max):
    """Pick (TM, TN, TK) so the pipelined working set fits `budget` bytes.
    TK is None when the whole contraction (d_in) can stay resident."""
    align_n = 256 if d_out >= 256 else 128      # match 2x256 MXU width on v6e/v7x
    tm = min(tm_max, _round_up(batch, sub_m))
    tn = min(tn_max, _round_up(d_out, align_n))
    while True:
        # 1) full-K residency if it fits (no accumulator, no K grid axis)
        if _footprint(tm, tn, d_in, in_item, out_item, False) <= budget:
            return tm, tn, None
        # 2) K-tiled: largest multiple-of-256 TK that fits (floor 128)
        if d_in > 256:
            tk = (d_in // 256) * 256
            while tk >= 256:
                if _footprint(tm, tn, tk, in_item, out_item, True) <= budget:
                    return tm, tn, tk
                tk -= 256
            if d_in > 128 and _footprint(tm, tn, 128, in_item, out_item, True) <= budget:
                return tm, tn, 128
        # 3) shrink TM first (never the lane-dense output width below 128)
        if tm > sub_m:
            tm = max(sub_m, _round_up(tm // 2, sub_m))
        elif tn > 128:
            tn = max(128, _round_up(tn // 2, 128))
        else:
            return tm, tn, (256 if d_in > 256 else None)


def _linear_kernel(x_ref, w_ref, b_ref, o_ref):
    # Full contraction resident: single MXU matmul (f32 acc) + VPU bias add.
    acc = jnp.dot(x_ref[...], w_ref[...], preferred_element_type=jnp.float32)
    o_ref[...] = (acc + b_ref[...].astype(jnp.float32)).astype(o_ref.dtype)


def _make_k_tiled_kernel(d_in, tk):
    ragged_k = (d_in % tk) != 0

    def kernel(x_ref, w_ref, b_ref, o_ref, acc_ref):
        k = pl.program_id(2)

        @pl.when(k == 0)
        def _():
            acc_ref[...] = jnp.zeros_like(acc_ref)

        x = x_ref[...]
        w = w_ref[...]
        if ragged_k:
            # Last K block overhangs d_in; the OOB region of the VMEM buffers is
            # stale garbage.  Zero BOTH operands' OOB slabs (0 * garbage could be
            # NaN, so one-sided masking is not enough).
            rem = d_in - k * tk
            x = jnp.where(lax.broadcasted_iota(jnp.int32, x.shape, 1) < rem,
                          x, jnp.zeros_like(x))
            w = jnp.where(lax.broadcasted_iota(jnp.int32, w.shape, 0) < rem,
                          w, jnp.zeros_like(w))
        acc_ref[...] += jnp.dot(x, w, preferred_element_type=jnp.float32)

        @pl.when(k == pl.num_programs(2) - 1)
        def _():
            o_ref[...] = (acc_ref[...] + b_ref[...].astype(jnp.float32)).astype(o_ref.dtype)

    return kernel


def flatnet_forward(x, w_t, b, *, tm_max=512, tn_max=512,
                    compute_dtype=None, vmem_budget_bytes=None):
    """y = x @ w_t + b  (PyTorch FlatNet forward / nn.Linear(d_in, d_out)).

    compute_dtype: optionally cast x / w_t (e.g. jnp.bfloat16) to halve DMA
    bytes for bandwidth-bound shapes; MXU accumulation stays f32 and the
    output keeps the original dtype.
    """
    batch, d_in = x.shape
    d_in_w, d_out = w_t.shape
    assert d_in == d_in_w
    assert b.shape == (d_out,)

    out_dtype = x.dtype
    if compute_dtype is not None:
        x = x.astype(compute_dtype)
        w_t = w_t.astype(compute_dtype)
    in_item = jnp.dtype(x.dtype).itemsize
    out_item = jnp.dtype(out_dtype).itemsize
    sub_m = 16 if in_item < 4 else 8          # bf16 sublane packing needs 16

    cap = _vmem_capacity_bytes()
    budget = vmem_budget_bytes if vmem_budget_bytes is not None else int(cap * 0.4)
    vmem_limit = max(32 * 1024 * 1024, min(int(cap * 0.7), 100 * 1024 * 1024))

    tm, tn, tk = _select_tiles(batch, d_in, d_out, in_item, out_item,
                               budget, sub_m, tm_max, tn_max)

    grid_m = pl.cdiv(batch, tm)
    grid_n = pl.cdiv(d_out, tn)
    b2d = b.reshape(1, d_out)

    # Adaptive reuse order: the larger operand's block index lives on the OUTER
    # grid axis so it is loaded once and reused across consecutive inner steps;
    # the smaller operand is the one that gets re-streamed.
    x_bytes = batch * d_in * in_item
    w_bytes = d_in * d_out * in_item
    w_outer = w_bytes >= x_bytes

    if tk is None:
        if w_outer:
            grid = (grid_n, grid_m)
            x_map = lambda j, i: (i, 0)
            w_map = lambda j, i: (0, j)
            b_map = lambda j, i: (0, j)
            o_map = lambda j, i: (i, j)
        else:
            grid = (grid_m, grid_n)
            x_map = lambda i, j: (i, 0)
            w_map = lambda i, j: (0, j)
            b_map = lambda i, j: (0, j)
            o_map = lambda i, j: (i, j)
        kernel = _linear_kernel
        x_block = (tm, d_in)
        w_block = (d_in, tn)
        scratch = []
        semantics = ("parallel", "parallel")
    else:
        grid_k = pl.cdiv(d_in, tk)
        if w_outer:
            grid = (grid_n, grid_m, grid_k)
            x_map = lambda j, i, k: (i, k)
            w_map = lambda j, i, k: (k, j)
            b_map = lambda j, i, k: (0, j)
            o_map = lambda j, i, k: (i, j)
        else:
            grid = (grid_m, grid_n, grid_k)
            x_map = lambda i, j, k: (i, k)
            w_map = lambda i, j, k: (k, j)
            b_map = lambda i, j, k: (0, j)
            o_map = lambda i, j, k: (i, j)
        kernel = _make_k_tiled_kernel(d_in, tk)
        x_block = (tm, tk)
        w_block = (tk, tn)
        scratch = [pltpu.VMEM((tm, tn), jnp.float32)]
        semantics = ("parallel", "parallel", "arbitrary")

    flops = 2 * batch * d_in * d_out
    bytes_accessed = (x.size * in_item + w_t.size * in_item
                      + b2d.size * b2d.dtype.itemsize + batch * d_out * out_item)

    return pl.pallas_call(
        kernel,
        out_shape=jax.ShapeDtypeStruct((batch, d_out), out_dtype),
        grid_spec=pltpu.PrefetchScalarGridSpec(
            num_scalar_prefetch=0,
            grid=grid,
            in_specs=[
                pl.BlockSpec(x_block, x_map),
                pl.BlockSpec(w_block, w_map),
                pl.BlockSpec((1, tn), b_map),
            ],
            out_specs=pl.BlockSpec((tm, tn), o_map),
            scratch_shapes=scratch,
        ),
        compiler_params=pltpu.CompilerParams(
            dimension_semantics=semantics,
            vmem_limit_bytes=vmem_limit,
        ),
        cost_estimate=pl.CostEstimate(
            flops=flops, transcendentals=0, bytes_accessed=bytes_accessed
        ),
    )(x, w_t, b2d)


def init_flatnet_params(key, d_inputs, d_outputs, dtype=jnp.float32):
    """Deterministic init matching FlatNet.__init__:
       - weight: kaiming_normal_(mode='fan_in') -> std = sqrt(2 / d_inputs)
       - bias:   nn.Linear default uniform(-1/sqrt(fan_in), 1/sqrt(fan_in))
    """
    kw, kb = jax.random.split(key)
    std = (2.0 / d_inputs) ** 0.5
    # PyTorch weight shape is (d_out, d_in); we store its transpose (d_in, d_out)
    w = std * jax.random.normal(kw, (d_outputs, d_inputs), dtype=dtype)
    w_t = w.T
    bound = 1.0 / (d_inputs ** 0.5)
    b = jax.random.uniform(kb, (d_outputs,), dtype=dtype, minval=-bound, maxval=bound)
    return w_t, b


if __name__ == "__main__":
    key = jax.random.PRNGKey(0)
    k_x1, k_p1, k_x2, k_p2, k_x3, k_p3 = jax.random.split(key, 6)

    # 1) Tiny FlatNet-scale shape: single tile, full-K resident, f32.
    batch, d_in, d_out = 8, 32, 16
    x = jax.random.normal(k_x1, (batch, d_in), dtype=jnp.float32)
    w_t, b = init_flatnet_params(k_p1, d_in, d_out)
    y = flatnet_forward(x, w_t, b)
    jax.block_until_ready(y)
    assert y.shape == (batch, d_out)
    assert jnp.allclose(y, x @ w_t + b, atol=1e-5, rtol=1e-5)

    # 2) Ragged shape: no wrapper padding, boundary blocks handled by masked
    #    loads/stores inside Pallas.
    batch2, d_in2, d_out2 = 300, 48, 200
    x2 = jax.random.normal(k_x2, (batch2, d_in2), dtype=jnp.float32)
    w_t2, b2 = init_flatnet_params(k_p2, d_in2, d_out2)
    y2 = flatnet_forward(x2, w_t2, b2)
    jax.block_until_ready(y2)
    assert y2.shape == (batch2, d_out2)
    assert jnp.allclose(y2, x2 @ w_t2 + b2, atol=1e-4, rtol=1e-4)

    # 2b) bf16 compute path (halved DMA bytes; f32 MXU accumulation).
    y2b = flatnet_forward(x2, w_t2, b2, compute_dtype=jnp.bfloat16)
    jax.block_until_ready(y2b)
    assert jnp.allclose(y2b, x2 @ w_t2 + b2, atol=1e-1, rtol=5e-2)

    # 3) Force the K-tiled path with a tiny VMEM budget; d_in=704 is ragged for
    #    every candidate TK, so the in-kernel contraction masking is exercised.
    batch3, d_in3, d_out3 = 256, 704, 384
    x3 = jax.random.normal(k_x3, (batch3, d_in3), dtype=jnp.float32)
    w_t3, b3 = init_flatnet_params(k_p3, d_in3, d_out3)
    y3 = flatnet_forward(x3, w_t3, b3, vmem_budget_bytes=3_000_000)
    jax.block_until_ready(y3)
    assert y3.shape == (batch3, d_out3)
    assert jnp.allclose(y3, x3 @ w_t3 + b3, atol=1e-3, rtol=1e-4)

    print("KERNEL_OK")
</pallas_src>

<mosaic_0001>
module attributes {stable_mosaic.version = 11 : i64} {
  func.func @_linear_kernel(%arg0: i32, %arg1: i32, %arg2: memref<8x32xf32, #tpu.memory_space<vmem>>, %arg3: memref<32x128xf32, #tpu.memory_space<vmem>>, %arg4: memref<1x128xf32, #tpu.memory_space<vmem>>, %arg5: memref<8x128xf32, #tpu.memory_space<vmem>>) attributes {dimension_semantics = [#tpu.dimension_semantics<parallel>, #tpu.dimension_semantics<parallel>], iteration_bounds = array<i64: 1, 1>, scalar_prefetch = 0 : i64, scratch_operands = 0 : i64, tpu.core_type = #tpu.core_type<tc>, window_params = [{transform_indices = @transform_0, window_bounds = array<i64: 8, 32>}, {transform_indices = @transform_1, window_bounds = array<i64: 32, 128>}, {transform_indices = @transform_2, window_bounds = array<i64: 1, 128>}, {transform_indices = @transform_3, window_bounds = array<i64: 8, 128>}]} {
    %c0 = arith.constant 0 : index
    %c0_0 = arith.constant 0 : index
    %0 = vector.load %arg2[%c0, %c0_0] : memref<8x32xf32, #tpu.memory_space<vmem>>, vector<8x32xf32>
    %c0_1 = arith.constant 0 : index
    %c0_2 = arith.constant 0 : index
    %1 = vector.load %arg3[%c0_1, %c0_2] : memref<32x128xf32, #tpu.memory_space<vmem>>, vector<32x128xf32>
    %cst = arith.constant dense<0.000000e+00> : vector<8x128xf32>
    %2 = tpu.matmul %0, %1, %cst {dimension_numbers = #tpu.dot_dimension_numbers<[1], [0], [0], [1], [0, 0, 1, 1], [], []>} : vector<8x32xf32>, vector<32x128xf32>, vector<8x128xf32> -> vector<8x128xf32>
    %c0_3 = arith.constant 0 : index
    %c0_4 = arith.constant 0 : index
    %3 = vector.load %arg4[%c0_3, %c0_4] : memref<1x128xf32, #tpu.memory_space<vmem>>, vector<1x128xf32>
    %4 = vector.broadcast %3 : vector<1x128xf32> to vector<8x128xf32>
    %5 = arith.addf %2, %4 : vector<8x128xf32>
    %c0_5 = arith.constant 0 : index
    %c0_6 = arith.constant 0 : index
    %6 = vector.load %arg5[%c0_5, %c0_6] : memref<8x128xf32, #tpu.memory_space<vmem>>, vector<8x128xf32>
    tpu.vector_store %arg5[%c0_5, %c0_6], %5 {strides = array<i32>} : memref<8x128xf32, #tpu.memory_space<vmem>>, vector<8x128xf32>,
    return
  }
  func.func @transform_0(%arg0: i32, %arg1: i32) -> (i32, i32) {
    %c0_i32 = arith.constant 0 : i32
    %c0_i32_0 = arith.constant 0 : i32
    return %arg1, %c0_i32 : i32, i32
  }
  func.func @transform_1(%arg0: i32, %arg1: i32) -> (i32, i32) {
    %c0_i32 = arith.constant 0 : i32
    %c0_i32_0 = arith.constant 0 : i32
    return %c0_i32, %arg0 : i32, i32
  }
  func.func @transform_2(%arg0: i32, %arg1: i32) -> (i32, i32) {
    %c0_i32 = arith.constant 0 : i32
    %c0_i32_0 = arith.constant 0 : i32
    return %c0_i32, %arg0 : i32, i32
  }
  func.func @transform_3(%arg0: i32, %arg1: i32) -> (i32, i32) {
    %c0_i32 = arith.constant 0 : i32
    return %arg1, %arg0 : i32, i32
  }
}

</mosaic_0001>

<bundles_post_ra>
// kernel: tpu_custom_call.1
= control target key start
LH: loop header
LB: loop body
LE: loop exit
PB: predicated region body
PF: predicated region fallthrough
CT: control target
= control target key end

     0   :  { %v168_v3 = vmov 0.0|0.0   ;;  %vm169_vm0 = vmmov 0   ;;  %v170_v6 = vmov 0.0   ;;  %s222_s0 = inlined_call_operand.vmem [shape: f32[8,32], index: 0, kind: input, shape index: {}]   ;;  %s223_s1 = inlined_call_operand.vmem [shape: f32[32,16], index: 1, kind: input, shape index: {}]   ;;  %s224_s2 = inlined_call_operand.vmem [shape: f32[1,16], index: 2, kind: input, shape index: {}]   ;;  %s225_s3 = inlined_call_operand.hbm [shape: f32[8,16], index: 3, kind: output, shape index: {}]  }
   0x1   :  { %v16_v0 = vld [vmem:[%s223_s1] sm:$0xff]  ;;  %v17_v1 = vld [vmem:[%s223_s1 + $0x8] sm:$0xff]  ;;  %v18_v2 = vld [vmem:[%s223_s1 + $0x10] sm:$0xff]  ;;  %134 = vmatprep.subr.bf16.mxu0 %v168_v3  ;;  %131 = vmatprep.mubr.msk.f32.mxu0 %vm169_vm0, %v170_v6 }
   0x2   :  { %v135_v4 = vpack.c.bf16 %v17_v1, %v16_v0  ;;  %v19_v5 = vld [vmem:[%s223_s1 + $0x18] sm:$0xff] }
   0x3   :  { %8 = vsyncpa [#allocation3], 0  ;;  %v138_v7 = vpack.c.bf16 %v19_v5, %v18_v2  ;;  %v15_v8 = vld [vmem:[%s222_s0] sm:$0xff]  ;;  %vm27_vm1 = vcmask 261120   ;;  %s171_s24 = smov [#allocation2]  }
   0x4   :  { %136 = vmatpush3.bf16.msra.mxu0 %v135_v4  ;;  %v116_v9 = vld [vmem:[%s224_s2] ss:$0 sm:$0xff]  ;;  %s108_s1 = sshll.u32 %s171_s24, 4  ;;  %s109_s1 = int_to_ptr.vmem [resolvable:$true] %s108_s1 }
   0x5   :  { %137 = vmatprep.subr.bf16.mxu0 %v168_v3  ;;  %s144_s25 = scalar_lea.vmem %s109_s1, 128  ;;  %p149_p1 = scmp.lt.s32.totalorder %s109_s1, %s109_s1 }
   0x6   :  { %p145_p0 = scmp.ne.s32.totalorder %s109_s1, %s144_s25  ;;  %p150_p2 = scmp.lt.s32.totalorder %s144_s25, %s144_s25 }
   0x8   :  { %139 = vmatpush3.bf16.msra.mxu0 %v138_v7  ;;  %p151_p3 = por %p150_p2, %p149_p1 }
   0xa   :  { %p152_p4 = pnand %p151_p3, %p145_p0 }
   0xb   :  { %132 = vmatmul.mubr.msk.f32.vlgmr.msra.gmra.mrb[0].mxu0 %vm27_vm1, %v15_v8 }
  0xde   :  { %v97_v10 = vpop.f32.mrb[0].mxu0 }
  0xdf   :  { %v98_v11 = vadd.f32 %v116_v9, %v97_v10  ;;  %v133_v12 = vpop.f32.mrb[1].mxu0 }
  0xe1   :  { %101 = vst [vmem:[#allocation2] sm:$0xff] %v98_v11 }
  0xe2   :  { %155 = shalt.err (!%p152_p4)
}
  0xe3   :  { %s156_s27 = scalar_lea.hbm %s225_s3, 128 }
  0xe4   :  { %p157_p5 = scmp.ne.s32.totalorder %s225_s3, %s156_s27  ;;  %p160_p6 = scmp.lt.u32.totalorder %s156_s27, %s225_s3 }
  0xe6   :  { %p162_p7 = pnand %p160_p6, %p157_p5 }
  0xe8   :  { %165 = shalt.err (!%p162_p7)
}
  0xe9   :  { %111 = dma.vmem_to_hbm [thread:$0]  %s109_s1, 128, %s225_s3, [#allocation3]  }
  0xea   :  { %166 = dma.done.wait [#allocation3], 128  }
  0xeb   :  { %167 = vsyncadd [#allocation3], 4294967168 }
  0xec   :  { %115 = vsyncpa [#allocation3], 1 }

</bundles_post_ra>
